<compile_context>
chip_gen: v7x
topology: tpu7x:2x2x1
jax: 0.10.0
libtpu: 0.0.40
codegen_flags: <defaults>
</compile_context>

<pallas_src>
import jax
import jax.numpy as jnp
from jax.experimental import pallas as pl
from jax.experimental.pallas import tpu as pltpu

BN_EPS = 1e-5


def _vmem_limit_bytes():
    """VMEM limit derived from the actual part (v5e/v6e 128 MiB, v7x 64 MiB)."""
    try:
        cap = int(pltpu.get_tpu_info().vmem_capacity_bytes)
    except Exception:  # pragma: no cover - conservative fallback
        cap = 64 * 1024 * 1024
    # ~70% of physical, clamped: ~45 MiB on v7x, ~90 MiB on v5e/v6e.
    return max(16 * 1024 * 1024, min(int(cap * 0.7), 100 * 1024 * 1024))


def _select_tile(hw, chan, chan_out, inner_dim, vmem_limit):
    """Pick TILE_HW (multiple of 128) from the VMEM budget of pass 2.

    Per spatial column (f32): double-buffered x + out tiles plus the hidden
    activation h and relu(h).  Returns (tile, hw_pad, n_tiles) with
    hw_pad == tile * n_tiles.
    """
    bytes_per_col = 4 * (2 * chan + 2 * chan_out + 2 * inner_dim)
    budget = int(vmem_limit * 0.6)          # headroom for weights/overheads
    tile = budget // bytes_per_col
    tile = max(128, min(tile, 16384))
    tile -= tile % 128

    hw_pad = ((hw + 127) // 128) * 128      # lane-align (masked-store free)
    if hw_pad <= tile:
        return hw_pad, hw_pad, 1
    n_tiles = -(-hw_pad // tile)
    return tile, tile * n_tiles, n_tiles


def _stats_kernel(x_ref, s_ref, g_ref):
    """Per-batch sufficient statistics of x: s = sum_p x, G = x @ x^T."""
    @pl.when(pl.program_id(1) == 0)
    def _():
        s_ref[...] = jnp.zeros_like(s_ref)
        g_ref[...] = jnp.zeros_like(g_ref)

    xt = x_ref[0]                                            # (C, TILE)
    s_ref[0] = s_ref[0] + jnp.sum(xt, axis=1, keepdims=True)  # (C, 1)
    g_ref[0] = g_ref[0] + jnp.dot(xt, xt.T,
                                  preferred_element_type=jnp.float32)  # (C,C)


def _apply_kernel(x_ref, w1s_ref, shift_ref, w2t_ref, b2_ref, o_ref):
    """h = (scale*W1^T) @ x ; relu(h + shift) ; out = W2^T @ h + b2."""
    h = jnp.dot(w1s_ref[...], x_ref[0], preferred_element_type=jnp.float32)
    h = jnp.maximum(h + shift_ref[...], 0.0)
    o_ref[0] = (jnp.dot(w2t_ref[...], h, preferred_element_type=jnp.float32)
                + b2_ref[...])


def _mlp_pallas_impl(x_nchw, w1, gamma, beta, w2, b2):
    """x_nchw: (N, chan, H, W) f32 -> (N, chan_out, H, W) f32.

    w1: (chan, inner_dim), w2: (inner_dim, chan_out), gamma/beta: (inner_dim,),
    b2: (chan_out,).  conv1's bias is omitted (cancelled by BatchNorm).
    """
    n, chan, hgt, wid = x_nchw.shape
    inner_dim = w1.shape[1]
    chan_out = w2.shape[1]
    hw = hgt * wid

    vmem_limit = _vmem_limit_bytes()
    tile, hw_pad, n_tiles = _select_tile(hw, chan, chan_out, inner_dim,
                                         vmem_limit)

    # Free, contiguous reshape; zero-pad HW to a tile multiple if needed
    # (zero pixels add nothing to s / G; padded output columns are dropped).
    x3 = x_nchw.reshape(n, chan, hw)
    if hw_pad != hw:
        x3 = jnp.pad(x3, ((0, 0), (0, 0), (0, hw_pad - hw)))

    w1t = jnp.transpose(w1)                          # (inner_dim, C)
    w2t = jnp.transpose(w2)                          # (chan_out, inner_dim)
    b2t = b2.reshape(chan_out, 1)

    # ---- Pass 1: per-batch partial sufficient statistics of x (streaming) --
    s_part, g_part = pl.pallas_call(
        _stats_kernel,
        out_shape=(jax.ShapeDtypeStruct((n, chan, 1), jnp.float32),
                   jax.ShapeDtypeStruct((n, chan, chan), jnp.float32)),
        grid=(n, n_tiles),
        in_specs=[pl.BlockSpec((1, chan, tile), lambda i, t: (i, 0, t))],
        out_specs=(pl.BlockSpec((1, chan, 1), lambda i, t: (i, 0, 0)),
                   pl.BlockSpec((1, chan, chan), lambda i, t: (i, 0, 0))),
        compiler_params=pltpu.CompilerParams(
            # batch axis "parallel" -> both TCs on v7x; tile axis is the
            # accumulation axis for the per-batch resident output blocks.
            dimension_semantics=("parallel", "arbitrary"),
            vmem_limit_bytes=vmem_limit),
    )(x3)

    # ---- Fold BN (training-mode batch stats) into conv1 weight + shift -----
    s_tot = jnp.sum(s_part, axis=0)                  # (C, 1)
    g_tot = jnp.sum(g_part, axis=0)                  # (C, C)
    m_total = jnp.float32(n * hw)                    # real (unpadded) count
    mu = s_tot / m_total                             # per-channel mean of x
    mean = jnp.dot(w1t, mu)                          # (inner_dim, 1) mean of h
    cov = g_tot / m_total - mu @ mu.T                # (C, C) covariance of x
    # var_i = w1t_i^T Cov w1t_i  (== E[h^2] - mean^2, clamped for fp error).
    # TODO(synk): for production scales with non-zero-mean activations use a
    # centered / Welford-style accumulation to avoid cancellation here.
    var = jnp.maximum(
        jnp.sum(jnp.dot(w1t, cov) * w1t, axis=1, keepdims=True), 0.0)
    scale = gamma.reshape(inner_dim, 1) * jax.lax.rsqrt(var + BN_EPS)
    shift = beta.reshape(inner_dim, 1) - mean * scale
    w1s = w1t * scale                                # BN scale folded into W1

    # ---- Pass 2: per-tile conv1 -> (+shift, ReLU) -> conv2 (fully parallel) -
    out3 = pl.pallas_call(
        _apply_kernel,
        out_shape=jax.ShapeDtypeStruct((n, chan_out, hw_pad), jnp.float32),
        grid=(n, n_tiles),
        in_specs=[
            pl.BlockSpec((1, chan, tile), lambda i, t: (i, 0, t)),
            pl.BlockSpec((inner_dim, chan), lambda i, t: (0, 0)),
            pl.BlockSpec((inner_dim, 1), lambda i, t: (0, 0)),
            pl.BlockSpec((chan_out, inner_dim), lambda i, t: (0, 0)),
            pl.BlockSpec((chan_out, 1), lambda i, t: (0, 0)),
        ],
        out_specs=pl.BlockSpec((1, chan_out, tile), lambda i, t: (i, 0, t)),
        compiler_params=pltpu.CompilerParams(
            dimension_semantics=("parallel", "parallel"),
            vmem_limit_bytes=vmem_limit),
    )(x3, w1s, shift, w2t, b2t)

    if hw_pad != hw:
        out3 = out3[:, :, :hw]
    return out3.reshape(n, chan_out, hgt, wid)


# jit the whole thing so the tiny BN-fold glue fuses with the pallas_calls.
mlp_pallas = jax.jit(_mlp_pallas_impl)


def mlp_reference(x_nchw, w1, b1, gamma, beta, w2, b2):
    """Pure-JAX reference matching the PyTorch MLP forward (training BN)."""
    n, chan, hgt, wid = x_nchw.shape
    x = jnp.transpose(x_nchw, (0, 2, 3, 1)).reshape(-1, chan)
    h = x @ w1 + b1
    mean = jnp.mean(h, axis=0, keepdims=True)
    var = jnp.mean((h - mean) ** 2, axis=0, keepdims=True)
    h = (h - mean) / jnp.sqrt(var + BN_EPS) * gamma + beta
    h = jnp.maximum(h, 0.0)
    o = h @ w2 + b2
    return jnp.transpose(o.reshape(n, hgt, wid, -1), (0, 3, 1, 2))


if __name__ == "__main__":
    # Small shapes consistent with the module: MLP(chan=4, chan_out=32,
    # inner_dim=128).
    N, CHAN, H, W = 2, 4, 16, 16
    INNER_DIM, CHAN_OUT = 128, 32

    key = jax.random.PRNGKey(0)
    kx, k1, kb1, kg, kb, k2, kb2 = jax.random.split(key, 7)

    x = jax.random.normal(kx, (N, CHAN, H, W), dtype=jnp.float32)

    # PyTorch conv weights are (out, in, 1, 1); store the (in, out) matrices.
    w1 = jax.random.normal(k1, (CHAN, INNER_DIM), dtype=jnp.float32) * 0.1
    b1 = jax.random.normal(kb1, (INNER_DIM,), dtype=jnp.float32) * 0.1
    gamma = 1.0 + 0.1 * jax.random.normal(kg, (INNER_DIM,), dtype=jnp.float32)
    beta = 0.1 * jax.random.normal(kb, (INNER_DIM,), dtype=jnp.float32)
    w2 = jax.random.normal(k2, (INNER_DIM, CHAN_OUT), dtype=jnp.float32) * 0.1
    b2 = jax.random.normal(kb2, (CHAN_OUT,), dtype=jnp.float32) * 0.1

    # Kernel omits b1 (exactly cancelled by BN's mean subtraction); the
    # reference includes it, which also validates that claim.
    out = mlp_pallas(x, w1, gamma, beta, w2, b2)
    out = jax.block_until_ready(out)

    ref = mlp_reference(x, w1, b1, gamma, beta, w2, b2)
    assert out.shape == (N, CHAN_OUT, H, W), out.shape
    assert jnp.allclose(out, ref, atol=5e-4, rtol=5e-4), (
        float(jnp.max(jnp.abs(out - ref))))

    print("KERNEL_OK")
</pallas_src>

<mosaic_0001>
module attributes {stable_mosaic.version = 11 : i64} {
  func.func @_stats_kernel(%arg0: i32, %arg1: i32, %arg2: memref<1x4x256xf32, #tpu.memory_space<vmem>>, %arg3: memref<1x4x1xf32, #tpu.memory_space<vmem>>, %arg4: memref<1x4x4xf32, #tpu.memory_space<vmem>>) attributes {dimension_semantics = [#tpu.dimension_semantics<parallel>, #tpu.dimension_semantics<arbitrary>], iteration_bounds = array<i64: 2, 1>, scalar_prefetch = 0 : i64, scratch_operands = 0 : i64, tpu.core_type = #tpu.core_type<tc>, window_params = [{transform_indices = @transform_0, window_bounds = array<i64: 1, 4, 256>}, {transform_indices = @transform_1, window_bounds = array<i64: 1, 4, 1>}, {transform_indices = @transform_2, window_bounds = array<i64: 1, 4, 4>}]} {
    %c0_i32 = arith.constant 0 : i32
    %0 = arith.cmpi eq, %arg1, %c0_i32 : i32
    %1 = arith.extui %0 : i1 to i32
    %c0_i32_0 = arith.constant 0 : i32
    %2 = arith.cmpi ne, %1, %c0_i32_0 : i32
    scf.if %2 {
      %cst_16 = arith.constant 0.000000e+00 : f32
      %21 = vector.broadcast %cst_16 : f32 to vector<1x4x1xf32>
      %c0_17 = arith.constant 0 : index
      %c0_18 = arith.constant 0 : index
      %c0_19 = arith.constant 0 : index
      %22 = vector.load %arg3[%c0_17, %c0_18, %c0_19] : memref<1x4x1xf32, #tpu.memory_space<vmem>>, vector<1x4x1xf32>
      tpu.vector_store %arg3[%c0_17, %c0_18, %c0_19], %21 {strides = array<i32>} : memref<1x4x1xf32, #tpu.memory_space<vmem>>, vector<1x4x1xf32>,
      %cst_20 = arith.constant 0.000000e+00 : f32
      %23 = vector.broadcast %cst_20 : f32 to vector<1x4x4xf32>
      %c0_21 = arith.constant 0 : index
      %c0_22 = arith.constant 0 : index
      %c0_23 = arith.constant 0 : index
      %24 = vector.load %arg4[%c0_21, %c0_22, %c0_23] : memref<1x4x4xf32, #tpu.memory_space<vmem>>, vector<1x4x4xf32>
      tpu.vector_store %arg4[%c0_21, %c0_22, %c0_23], %23 {strides = array<i32>} : memref<1x4x4xf32, #tpu.memory_space<vmem>>, vector<1x4x4xf32>,
    } else {
    }
    %c0 = arith.constant 0 : index
    %c0_1 = arith.constant 0 : index
    %c0_2 = arith.constant 0 : index
    %3 = vector.load %arg2[%c0, %c0_1, %c0_2] : memref<1x4x256xf32, #tpu.memory_space<vmem>>, vector<1x4x256xf32>
    %4 = vector.shape_cast %3 : vector<1x4x256xf32> to vector<4x256xf32>
    %c0_3 = arith.constant 0 : index
    %c0_4 = arith.constant 0 : index
    %c0_5 = arith.constant 0 : index
    %5 = vector.load %arg3[%c0_3, %c0_4, %c0_5] : memref<1x4x1xf32, #tpu.memory_space<vmem>>, vector<1x4x1xf32>
    %6 = vector.shape_cast %5 : vector<1x4x1xf32> to vector<4x1xf32>
    %cst = arith.constant dense<0.000000e+00> : vector<4xf32>
    %7 = vector.multi_reduction <add>, %4, %cst [1] : vector<4x256xf32> to vector<4xf32>
    %8 = vector.shape_cast %7 : vector<4xf32> to vector<4x1xf32>
    %9 = arith.addf %6, %8 : vector<4x1xf32>
    %c0_6 = arith.constant 0 : index
    %c0_7 = arith.constant 0 : index
    %c0_8 = arith.constant 0 : index
    %10 = vector.load %arg3[%c0_6, %c0_7, %c0_8] : memref<1x4x1xf32, #tpu.memory_space<vmem>>, vector<1x4x1xf32>
    %11 = vector.shape_cast %10 : vector<1x4x1xf32> to vector<4x1xf32>
    %12 = vector.shape_cast %9 : vector<4x1xf32> to vector<1x4x1xf32>
    tpu.vector_store %arg3[%c0_6, %c0_7, %c0_8], %12 {strides = array<i32>} : memref<1x4x1xf32, #tpu.memory_space<vmem>>, vector<1x4x1xf32>,
    %c0_9 = arith.constant 0 : index
    %c0_10 = arith.constant 0 : index
    %c0_11 = arith.constant 0 : index
    %13 = vector.load %arg4[%c0_9, %c0_10, %c0_11] : memref<1x4x4xf32, #tpu.memory_space<vmem>>, vector<1x4x4xf32>
    %14 = vector.shape_cast %13 : vector<1x4x4xf32> to vector<4x4xf32>
    %15 = tpu.transpose %4, [1, 0] : vector<4x256xf32> -> vector<256x4xf32>
    %cst_12 = arith.constant dense<0.000000e+00> : vector<4x4xf32>
    %16 = tpu.matmul %4, %15, %cst_12 {dimension_numbers = #tpu.dot_dimension_numbers<[1], [0], [0], [1], [0, 0, 1, 1], [], []>} : vector<4x256xf32>, vector<256x4xf32>, vector<4x4xf32> -> vector<4x4xf32>
    %17 = arith.addf %14, %16 : vector<4x4xf32>
    %c0_13 = arith.constant 0 : index
    %c0_14 = arith.constant 0 : index
    %c0_15 = arith.constant 0 : index
    %18 = vector.load %arg4[%c0_13, %c0_14, %c0_15] : memref<1x4x4xf32, #tpu.memory_space<vmem>>, vector<1x4x4xf32>
    %19 = vector.shape_cast %18 : vector<1x4x4xf32> to vector<4x4xf32>
    %20 = vector.shape_cast %17 : vector<4x4xf32> to vector<1x4x4xf32>
    tpu.vector_store %arg4[%c0_13, %c0_14, %c0_15], %20 {strides = array<i32>} : memref<1x4x4xf32, #tpu.memory_space<vmem>>, vector<1x4x4xf32>,
    return
  }
  func.func @transform_0(%arg0: i32, %arg1: i32) -> (i32, i32, i32) {
    %c0_i32 = arith.constant 0 : i32
    %c0_i32_0 = arith.constant 0 : i32
    return %arg0, %c0_i32, %arg1 : i32, i32, i32
  }
  func.func @transform_1(%arg0: i32, %arg1: i32) -> (i32, i32, i32) {
    %c0_i32 = arith.constant 0 : i32
    %c0_i32_0 = arith.constant 0 : i32
    %c0_i32_1 = arith.constant 0 : i32
    return %arg0, %c0_i32, %c0_i32_0 : i32, i32, i32
  }
  func.func @transform_2(%arg0: i32, %arg1: i32) -> (i32, i32, i32) {
    %c0_i32 = arith.constant 0 : i32
    %c0_i32_0 = arith.constant 0 : i32
    %c0_i32_1 = arith.constant 0 : i32
    return %arg0, %c0_i32, %c0_i32_0 : i32, i32, i32
  }
}

module attributes {stable_mosaic.version = 11 : i64} {
  func.func @_apply_kernel(%arg0: i32, %arg1: i32, %arg2: memref<1x4x256xf32, #tpu.memory_space<vmem>>, %arg3: memref<128x4xf32, #tpu.memory_space<vmem>>, %arg4: memref<128x1xf32, #tpu.memory_space<vmem>>, %arg5: memref<32x128xf32, #tpu.memory_space<vmem>>, %arg6: memref<32x1xf32, #tpu.memory_space<vmem>>, %arg7: memref<1x32x256xf32, #tpu.memory_space<vmem>>) attributes {dimension_semantics = [#tpu.dimension_semantics<parallel>, #tpu.dimension_semantics<parallel>], iteration_bounds = array<i64: 2, 1>, scalar_prefetch = 0 : i64, scratch_operands = 0 : i64, tpu.core_type = #tpu.core_type<tc>, window_params = [{transform_indices = @transform_0, window_bounds = array<i64: 1, 4, 256>}, {pipeline_mode = #tpu.pipeline_mode<synchronous>, transform_indices = @transform_1, window_bounds = array<i64: 128, 4>}, {pipeline_mode = #tpu.pipeline_mode<synchronous>, transform_indices = @transform_2, window_bounds = array<i64: 128, 1>}, {pipeline_mode = #tpu.pipeline_mode<synchronous>, transform_indices = @transform_3, window_bounds = array<i64: 32, 128>}, {pipeline_mode = #tpu.pipeline_mode<synchronous>, transform_indices = @transform_4, window_bounds = array<i64: 32, 1>}, {transform_indices = @transform_5, window_bounds = array<i64: 1, 32, 256>}]} {
    %c0 = arith.constant 0 : index
    %c0_0 = arith.constant 0 : index
    %0 = vector.load %arg3[%c0, %c0_0] : memref<128x4xf32, #tpu.memory_space<vmem>>, vector<128x4xf32>
    %c0_1 = arith.constant 0 : index
    %c0_2 = arith.constant 0 : index
    %c0_3 = arith.constant 0 : index
    %1 = vector.load %arg2[%c0_1, %c0_2, %c0_3] : memref<1x4x256xf32, #tpu.memory_space<vmem>>, vector<1x4x256xf32>
    %2 = vector.shape_cast %1 : vector<1x4x256xf32> to vector<4x256xf32>
    %cst = arith.constant dense<0.000000e+00> : vector<128x256xf32>
    %3 = tpu.matmul %0, %2, %cst {dimension_numbers = #tpu.dot_dimension_numbers<[1], [0], [0], [1], [0, 0, 1, 1], [], []>} : vector<128x4xf32>, vector<4x256xf32>, vector<128x256xf32> -> vector<128x256xf32>
    %c0_4 = arith.constant 0 : index
    %c0_5 = arith.constant 0 : index
    %4 = vector.load %arg4[%c0_4, %c0_5] : memref<128x1xf32, #tpu.memory_space<vmem>>, vector<128x1xf32>
    %5 = vector.broadcast %4 : vector<128x1xf32> to vector<128x256xf32>
    %6 = arith.addf %3, %5 : vector<128x256xf32>
    %cst_6 = arith.constant 0.000000e+00 : f32
    %7 = vector.broadcast %cst_6 : f32 to vector<128x256xf32>
    %8 = arith.maximumf %6, %7 : vector<128x256xf32>
    %c0_7 = arith.constant 0 : index
    %c0_8 = arith.constant 0 : index
    %9 = vector.load %arg5[%c0_7, %c0_8] : memref<32x128xf32, #tpu.memory_space<vmem>>, vector<32x128xf32>
    %cst_9 = arith.constant dense<0.000000e+00> : vector<32x256xf32>
    %10 = tpu.matmul %9, %8, %cst_9 {dimension_numbers = #tpu.dot_dimension_numbers<[1], [0], [0], [1], [0, 0, 1, 1], [], []>} : vector<32x128xf32>, vector<128x256xf32>, vector<32x256xf32> -> vector<32x256xf32>
    %c0_10 = arith.constant 0 : index
    %c0_11 = arith.constant 0 : index
    %11 = vector.load %arg6[%c0_10, %c0_11] : memref<32x1xf32, #tpu.memory_space<vmem>>, vector<32x1xf32>
    %12 = vector.broadcast %11 : vector<32x1xf32> to vector<32x256xf32>
    %13 = arith.addf %10, %12 : vector<32x256xf32>
    %c0_12 = arith.constant 0 : index
    %c0_13 = arith.constant 0 : index
    %c0_14 = arith.constant 0 : index
    %14 = vector.load %arg7[%c0_12, %c0_13, %c0_14] : memref<1x32x256xf32, #tpu.memory_space<vmem>>, vector<1x32x256xf32>
    %15 = vector.shape_cast %14 : vector<1x32x256xf32> to vector<32x256xf32>
    %16 = vector.shape_cast %13 : vector<32x256xf32> to vector<1x32x256xf32>
    tpu.vector_store %arg7[%c0_12, %c0_13, %c0_14], %16 {strides = array<i32>} : memref<1x32x256xf32, #tpu.memory_space<vmem>>, vector<1x32x256xf32>,
    return
  }
  func.func @transform_0(%arg0: i32, %arg1: i32) -> (i32, i32, i32) {
    %c0_i32 = arith.constant 0 : i32
    %c0_i32_0 = arith.constant 0 : i32
    return %arg0, %c0_i32, %arg1 : i32, i32, i32
  }
  func.func @transform_1(%arg0: i32, %arg1: i32) -> (i32, i32) {
    %c0_i32 = arith.constant 0 : i32
    %c0_i32_0 = arith.constant 0 : i32
    %c0_i32_1 = arith.constant 0 : i32
    return %c0_i32, %c0_i32_0 : i32, i32
  }
  func.func @transform_2(%arg0: i32, %arg1: i32) -> (i32, i32) {
    %c0_i32 = arith.constant 0 : i32
    %c0_i32_0 = arith.constant 0 : i32
    %c0_i32_1 = arith.constant 0 : i32
    return %c0_i32, %c0_i32_0 : i32, i32
  }
  func.func @transform_3(%arg0: i32, %arg1: i32) -> (i32, i32) {
    %c0_i32 = arith.constant 0 : i32
    %c0_i32_0 = arith.constant 0 : i32
    %c0_i32_1 = arith.constant 0 : i32
    return %c0_i32, %c0_i32_0 : i32, i32
  }
  func.func @transform_4(%arg0: i32, %arg1: i32) -> (i32, i32) {
    %c0_i32 = arith.constant 0 : i32
    %c0_i32_0 = arith.constant 0 : i32
    %c0_i32_1 = arith.constant 0 : i32
    return %c0_i32, %c0_i32_0 : i32, i32
  }
  func.func @transform_5(%arg0: i32, %arg1: i32) -> (i32, i32, i32) {
    %c0_i32 = arith.constant 0 : i32
    %c0_i32_0 = arith.constant 0 : i32
    return %arg0, %c0_i32, %arg1 : i32, i32, i32
  }
}

</mosaic_0001>

<bundles_post_ra>
// kernel: _mlp_pallas_impl.2
= control target key start
LH: loop header
LB: loop body
LE: loop exit
PB: predicated region body
PF: predicated region fallthrough
CT: control target
= control target key end

     0   :  { %s453_s9 = smov 0   ;;  %s455_s10 = smov 0   ;;  %s491_s0 = inlined_call_operand.vmem [shape: f32[2,4,256], index: 0, kind: input, shape index: {}]   ;;  %s492_s1 = inlined_call_operand.vmem [shape: f32[2,4,1], index: 1, kind: output, shape index: {0}]   ;;  %s493_s2 = inlined_call_operand.vmem [shape: f32[2,4,4], index: 2, kind: output, shape index: {1}]  }
   0x1   :  { %s457_s11 = smov 0  }
   0x2 LB: > { %s25_s12 = sadd.s32 1, %s431_s10  ;;  %p379_p0 = scmp.ge.s32.totalorder %s435_s11, 1  ;;  %s435_s11 = sphi %s457_s11, %s13_s11   ;;  %s431_s10 = sphi %s455_s10, %s495_s10   ;;  %s427_s9 = sphi %s453_s9, %s494_s9  }
   0x3   : > { %p27_p1 = scmp.ge.s32.totalorder %s25_s12, 2  ;;  %p134_p2 = scmp.lt.s32.totalorder %s435_s11, 3 }
   0x5   : > { %s497_s12 = smov (%p27_p1, %s25_s12), 0  ;;  %p135_p3 = pnand %p379_p0, %p134_p2 }
   0x6   : > { %p164_p4 = scmp.lt.s32.totalorder (!%p135_p3), %s427_s9, 1  ;;  %vm185_vm0 = vcmask (!%p135_p3), 3072   ;;  %vm194_vm1 = vcmask (!%p135_p3), 1043456   ;;  %v437_v1 = vmov (!%p135_p3), 0.0   ;;  %vm187_vm2 = vcmask (!%p135_p3), 27648  }
   0x7   : > { %138 = sbr.rel (%p135_p3) target bundleno = 239 (0xef), region = 24 }
   0xe   : > { %s499_s9 = smov (!%p164_p4, %s427_s9), 1 }
   0xf   : > { %s386_s13 = sshll.u32 %s499_s9, 3  ;;  %s382_s14 = sshll.u32 %s499_s9, 2 }
  0x10   : > { %s171_s17 = scalar_lea.vmem %s491_s0, %s386_s13  ;;  %s176_s20 = scalar_lea.vmem %s492_s1, %s382_s14 }
  0x11   : > { %v189_v0 = vld [vmem:[%s171_s17] sm:$0xff]  ;;  %186 = vst.msk [vmem:[%s176_s20] sm:$0xf] %vm185_vm0, %v437_v1  ;;  %s180_s23 = scalar_lea.vmem %s493_s2, %s382_s14 }
  0x12   : > { %v192_v2 = vcombine.high %v189_v0, %v189_v0  ;;  %v195_v3 = vsel %vm194_vm1, %v189_v0, 0.0  ;;  %188 = vst.msk [vmem:[%s180_s23] sm:$0xf] %vm187_vm2, %v437_v1 }
  0x14   : > { %204 = vmatprep.subr.mxu0 %v192_v2  ;;  %268 = vmatprep.mubr.f32.mxu0 %v192_v2  ;;  %v196_v4 = vsel %vm194_vm1, %v192_v2, 0.0 }
  0x15   : > { %205 = vmatpush1.xpose.msra.mxu0 %v189_v0  ;;  %v197_v5 = vadd.f32 %v196_v4, %v195_v3 }
  0x17   : > { %198 = vadd.xlane.f32.xlu0 %v197_v5 }
  0x18   : > { %269 = vmatmul.mubr.f32.vlgmr.msra.gmra.mrb[0].mxu0 %v189_v0  ;;  %v190_v6 = vld [vmem:[%s176_s20] sm:$0xf] }
  0x19   : > { %v203_v9 = vld [vmem:[%s180_s23] sm:$0xf] }
  0xa4   : > { %v199_v7 = vpop.xlane.xlu0 %198 }
  0xa5   : > { %v200_v8 = vadd.f32 %v199_v7, %v190_v6 }
  0xa7   : > { %202 = vst.msk [vmem:[%s176_s20] sm:$0xf] %vm185_vm0, %v200_v8 }
  0xeb   : > { %v270_v10 = vpop.f32.mrb[0].mxu0 }
  0xec   : > { %v274_v11 = vadd.f32 %v270_v10, %v203_v9  ;;  %v272_v12 = vpop.f32.mrb[1].mxu0 }
  0xee   : > { %276 = vst.msk [vmem:[%s180_s23] sm:$0xf] %vm187_vm2, %v274_v11 }
  0xef PF: > { %s13_s11 = sadd.s32 1, %s435_s11   ;;  %s494_s9 = smov %s431_s10 }
  0xf0   : > { %p10_p5 = scmp.ge.s32.totalorder %s13_s11, 4   ;;  %s495_s10 = smov %s497_s12 }
  0xf2   :  { %12 = sbr.rel (!%p10_p5) target bundleno = 2 (0x2), region = 70 }

// kernel: _mlp_pallas_impl.3
= control target key start
LH: loop header
LB: loop body
LE: loop exit
PB: predicated region body
PF: predicated region fallthrough
CT: control target
= control target key end

     0   :  { %s986_s18 = smov 0   ;;  %s988_s19 = smov 0   ;;  %s1179_s0 = inlined_call_operand.vmem [shape: f32[2,4,256], index: 0, kind: input, shape index: {}]   ;;  %s1180_s1 = inlined_call_operand.vmem [shape: f32[128,4], index: 1, kind: input, shape index: {}]   ;;  %s1181_s2 = inlined_call_operand.vmem [shape: f32[128,1], index: 2, kind: input, shape index: {}]   ;;  %s1182_s3 = inlined_call_operand.vmem [shape: f32[32,128], index: 3, kind: input, shape index: {}]   ;;  %s1183_s4 = inlined_call_operand.vmem [shape: f32[32,1], index: 4, kind: input, shape index: {}]   ;;  %s1184_s5 = inlined_call_operand.vmem [shape: f32[2,32,256], index: 5, kind: output, shape index: {}]  }
   0x1   :  { %s990_s20 = smov 0  }
   0x2 LB: > { %s27_s21 = sadd.s32 1, %s948_s19  ;;  %p842_p0 = scmp.ge.s32.totalorder %s952_s20, 1  ;;  %s952_s20 = sphi %s990_s20, %s15_s20   ;;  %s948_s19 = sphi %s988_s19, %s1186_s19   ;;  %s944_s18 = sphi %s986_s18, %s1185_s18  }
   0x3   : > { %p29_p1 = scmp.ge.s32.totalorder %s27_s21, 2  ;;  %p208_p2 = scmp.lt.s32.totalorder %s952_s20, 3 }
   0x5   : > { %s1188_s21 = smov (%p29_p1, %s27_s21), 0  ;;  %p209_p3 = pnand %p842_p0, %p208_p2 }
   0x6   : > { %p245_p4 = scmp.lt.s32.totalorder (!%p209_p3), %s944_s18, 1  ;;  %v954_v0 = vmov (!%p209_p3), 0.0   ;;  %v955_v1 = vmov (!%p209_p3), 0   ;;  %v281_v2 = vld [vmem:[%s1181_s2] sm:$0xff] (!%p209_p3)  ;;  %vm428_vm0 = vcmask (!%p209_p3), 1043456   ;;  %v283_v4 = vld [vmem:[%s1181_s2 + $0x10] sm:$0xff] (!%p209_p3) }
   0x7   : > { %212 = sbr.rel (%p209_p3) target bundleno = 533 (0x215), region = 40  ;;  %497 = vmatprep.mubr.f32.mxu0 (!%p209_p3), %v954_v0  ;;  %718 = vmatprep.mubr.f32.mxu1 (!%p209_p3), %v954_v0  ;;  %v282_v6 = vld [vmem:[%s1181_s2 + $0x8] sm:$0xff] (!%p209_p3)  ;;  %v264_v7 = vld [vmem:[%s1180_s1] sm:$0xff] (!%p209_p3)  ;;  %vm379_vm1 = vcmask (!%p209_p3), 31744   ;;  %v284_v8 = vld [vmem:[%s1181_s2 + $0x18] sm:$0xff] (!%p209_p3) }
   0x8   : > { %927 = vset.pattern.permute.xlu0 (!%p209_p3), %v955_v1  ;;  %928 = vset.pattern.permute.xlu1 (!%p209_p3), %v955_v1  ;;  %v285_v9 = vld [vmem:[%s1181_s2 + $0x20] sm:$0xff] (!%p209_p3)  ;;  %v265_v10 = vld [vmem:[%s1180_s1 + $0x8] sm:$0xff] (!%p209_p3)  ;;  %v287_v12 = vld [vmem:[%s1181_s2 + $0x30] sm:$0xff] (!%p209_p3) }
   0x9   : > { %299 = vperm.xlu0 (!%p209_p3), %927, %v281_v2   ;;  %309 = vperm.xlu1 (!%p209_p3), %928, %v283_v4   ;;  %v286_v11 = vld [vmem:[%s1181_s2 + $0x28] sm:$0xff] (!%p209_p3)  ;;  %v266_v13 = vld [vmem:[%s1180_s1 + $0x10] sm:$0xff] (!%p209_p3)  ;;  %v288_v14 = vld [vmem:[%s1181_s2 + $0x38] sm:$0xff] (!%p209_p3) }
   0xa   : > { %v289_v15 = vld [vmem:[%s1181_s2 + $0x40] sm:$0xff] (!%p209_p3)  ;;  %v267_v16 = vld [vmem:[%s1180_s1 + $0x18] sm:$0xff] (!%p209_p3)  ;;  %v290_v17 = vld [vmem:[%s1181_s2 + $0x48] sm:$0xff] (!%p209_p3) }
   0xb   : > { %v291_v18 = vld [vmem:[%s1181_s2 + $0x50] sm:$0xff] (!%p209_p3)  ;;  %v268_v19 = vld [vmem:[%s1180_s1 + $0x20] sm:$0xff] (!%p209_p3)  ;;  %v292_v20 = vld [vmem:[%s1181_s2 + $0x58] sm:$0xff] (!%p209_p3) }
   0xc   : > { %v293_v21 = vld [vmem:[%s1181_s2 + $0x60] sm:$0xff] (!%p209_p3)  ;;  %v269_v22 = vld [vmem:[%s1180_s1 + $0x28] sm:$0xff] (!%p209_p3)  ;;  %v295_v24 = vld [vmem:[%s1181_s2 + $0x70] sm:$0xff] (!%p209_p3) }
   0xd   : > { %304 = vperm.xlu0 (!%p209_p3), %927, %v282_v6   ;;  %314 = vperm.xlu1 (!%p209_p3), %928, %v284_v8   ;;  %v294_v23 = vld [vmem:[%s1181_s2 + $0x68] sm:$0xff] (!%p209_p3)  ;;  %v270_v25 = vld [vmem:[%s1180_s1 + $0x30] sm:$0xff] (!%p209_p3)  ;;  %v296_v26 = vld [vmem:[%s1181_s2 + $0x78] sm:$0xff] (!%p209_p3) }
   0xe   : > { %s1190_s18 = smov (!%p245_p4, %s944_s18), 1  ;;  %v630_v27 = vld [vmem:[%s1183_s4] sm:$0xff]  ;;  %v271_v28 = vld [vmem:[%s1180_s1 + $0x38] sm:$0xff]  ;;  %v631_v29 = vld [vmem:[%s1183_s4 + $0x8] sm:$0xff] }
   0xf   : > { %s867_s22 = sshll.u32 %s1190_s18, 3  ;;  %v632_v30 = vld [vmem:[%s1183_s4 + $0x10] sm:$0xff]  ;;  %v272_v31 = vld [vmem:[%s1180_s1 + $0x40] sm:$0xff]  ;;  %v633_v32 = vld [vmem:[%s1183_s4 + $0x18] sm:$0xff] }
  0x10   : > { %s252_s25 = scalar_lea.vmem %s1179_s0, %s867_s22  ;;  %v273_v33 = vld [vmem:[%s1180_s1 + $0x48] sm:$0xff]  ;;  %v274_v34 = vld [vmem:[%s1180_s1 + $0x50] sm:$0xff]  ;;  %v275_v35 = vld [vmem:[%s1180_s1 + $0x58] sm:$0xff]  ;;  %s868_s22 = sshll.u32 %s1190_s18, 6 }
  0x11   : > { %v280_v3 = vld [vmem:[%s252_s25] sm:$0xff]  ;;  %319 = vperm.xlu0 %927, %v285_v9   ;;  %324 = vperm.xlu1 %928, %v286_v11   ;;  %v277_v37 = vld [vmem:[%s1180_s1 + $0x68] sm:$0xff]  ;;  %v278_v38 = vld [vmem:[%s1180_s1 + $0x70] sm:$0xff]  ;;  %s262_s25 = scalar_lea.vmem %s1184_s5, %s868_s22 }
  0x12   : > { %v378_v5 = vcombine.high %v280_v3, %v280_v3  ;;  %v276_v36 = vld [vmem:[%s1180_s1 + $0x60] sm:$0xff]  ;;  %v279_v39 = vld [vmem:[%s1180_s1 + $0x78] sm:$0xff] }
  0x14   : > { %847 = vmatprep.subr.msk.mxu0 %vm428_vm0, %v378_v5 }
  0x15   : > { %848 = vmatpush1.msk.msra.mxu0 %vm428_vm0, %v280_v3  ;;  %329 = vperm.xlu0 %927, %v287_v12  }
  0x16   : > { %849 = vmatmul.mubr.msk.f32.vlgmr.msra.gmra.mrb[0].mxu0 %vm379_vm1, %v264_v7  ;;  %334 = vperm.xlu1 %928, %v288_v14  }
  0x17   : > { %503 = vmatprep.mubr.f32.mxu0 %v954_v0 }
  0x19   : > { %339 = vperm.xlu0 %927, %v289_v15  }
  0x1a   : > { %850 = vmatmul.mubr.msk.f32.gmra.mrb[2].mxu0 %vm379_vm1, %v265_v10  ;;  %344 = vperm.xlu1 %928, %v290_v17  }
  0x1b   : > { %509 = vmatprep.mubr.f32.mxu0 %v954_v0 }
  0x1d   : > { %349 = vperm.xlu0 %927, %v291_v18  }
  0x1e   : > { %851 = vmatmul.mubr.msk.f32.gmra.mrb[4].mxu0 %vm379_vm1, %v266_v13  ;;  %354 = vperm.xlu1 %928, %v292_v20  }
  0x1f   : > { %515 = vmatprep.mubr.f32.mxu0 %v954_v0 }
  0x21   : > { %359 = vperm.xlu0 %927, %v293_v21  }
  0x22   : > { %852 = vmatmul.mubr.msk.f32.gmra.mrb[6].mxu0 %vm379_vm1, %v267_v16  ;;  %364 = vperm.xlu1 %928, %v294_v23  }
  0x23   : > { %521 = vmatprep.mubr.f32.mxu0 %v954_v0 }
  0x25   : > { %369 = vperm.xlu0 %927, %v295_v24  }
  0x26   : > { %853 = vmatmul.mubr.msk.f32.gmra.mrb[8].mxu0 %vm379_vm1, %v268_v19  ;;  %374 = vperm.xlu1 %928, %v296_v26  }
  0x27   : > { %527 = vmatprep.mubr.f32.mxu0 %v954_v0 }
  0x29   : > { %636 = vperm.xlu0 %927, %v630_v27  }
  0x2a   : > { %854 = vmatmul.mubr.msk.f32.gmra.mrb[10].mxu0 %vm379_vm1, %v269_v22  ;;  %641 = vperm.xlu1 %928, %v631_v29  }
  0x2b   : > { %533 = vmatprep.mubr.f32.mxu0 %v954_v0 }
  0x2d   : > { %646 = vperm.xlu0 %927, %v632_v30  }
  0x2e   : > { %855 = vmatmul.mubr.msk.f32.gmra.mrb[12].mxu0 %vm379_vm1, %v270_v25  ;;  %651 = vperm.xlu1 %928, %v633_v32  }
  0x2f   : > { %539 = vmatprep.mubr.f32.mxu0 %v954_v0 }
  0x32   : > { %856 = vmatmul.mubr.msk.f32.gmra.mrb[14].mxu0 %vm379_vm1, %v271_v28 }
  0x33   : > { %545 = vmatprep.mubr.f32.mxu0 %v954_v0 }
  0x36   : > { %857 = vmatmul.mubr.msk.f32.gmra.mrb[16].mxu0 %vm379_vm1, %v272_v31 }
  0x37   : > { %551 = vmatprep.mubr.f32.mxu0 %v954_v0 }
  0x3a   : > { %858 = vmatmul.mubr.msk.f32.gmra.mrb[18].mxu0 %vm379_vm1, %v273_v33 }
  0x3b   : > { %557 = vmatprep.mubr.f32.mxu0 %v954_v0 }
  0x3e   : > { %859 = vmatmul.mubr.msk.f32.gmra.mrb[20].mxu0 %vm379_vm1, %v274_v34 }
  0x3f   : > { %563 = vmatprep.mubr.f32.mxu0 %v954_v0 }
  0x42   : > { %860 = vmatmul.mubr.msk.f32.gmra.mrb[22].mxu0 %vm379_vm1, %v275_v35 }
  0x43   : > { %569 = vmatprep.mubr.f32.mxu0 %v954_v0 }
  0x46   : > { %861 = vmatmul.mubr.msk.f32.gmra.mrb[24].mxu0 %vm379_vm1, %v276_v36 }
  0x47   : > { %575 = vmatprep.mubr.f32.mxu0 %v954_v0 }
  0x4a   : > { %862 = vmatmul.mubr.msk.f32.gmra.mrb[26].mxu0 %vm379_vm1, %v277_v37 }
  0x4b   : > { %581 = vmatprep.mubr.f32.mxu0 %v954_v0 }
  0x4e   : > { %863 = vmatmul.mubr.msk.f32.gmra.mrb[28].mxu0 %vm379_vm1, %v278_v38 }
  0x4f   : > { %587 = vmatprep.mubr.f32.mxu0 %v954_v0 }
  0x52   : > { %864 = vmatmul.mubr.msk.f32.gmra.mrb[30].mxu0 %vm379_vm1, %v279_v39 }
  0x88   : > { %v300_v40 = vpop.permute.xlu0 %299  ;;  %v310_v49 = vpop.permute.xlu1 %309 }
  0x8c   : > { %v305_v44 = vpop.permute.xlu0 %304  ;;  %v315_v60 = vpop.permute.xlu1 %314 }
  0x90   : > { %v320_v10 = vpop.permute.xlu0 %319  ;;  %v325_v13 = vpop.permute.xlu1 %324 }
  0x94   : > { %v330_v26 = vpop.permute.xlu0 %329 }
  0x95   : > { %v335_v29 = vpop.permute.xlu1 %334 }
  0xe9   : > { %v499_v41 = vpop.f32.mrb[0].mxu0 }
  0xea   : > { %v501_v42 = vpop.f32.mrb[1].mxu0  ;;  %v500_v43 = vadd.f32 %v499_v41, %v300_v40 }
  0xeb   : > { %v502_v45 = vadd.f32 %v501_v42, %v300_v40  ;;  %v340_v42 = vpop.permute.xlu0 %339 }
  0xec   : > { %v594_v51 = vmax.f32 %v500_v43, 0.0 }
  0xed   : > { %v505_v46 = vpop.f32.mrb[2].mxu0  ;;  %v595_v53 = vmax.f32 %v502_v45, 0.0  ;;  %v345_v45 = vpop.permute.xlu1 %344 }
  0xee   : > { %v506_v47 = vadd.f32 %v505_v46, %v305_v44  ;;  %v507_v48 = vpop.f32.mrb[3].mxu0 }
  0xef   : > { %v508_v50 = vadd.f32 %v507_v48, %v305_v44 }
  0xf0   : > { %v596_v52 = vmax.f32 %v506_v47, 0.0 }
  0xf1   : > { %v597_v54 = vmax.f32 %v508_v50, 0.0  ;;  %v511_v55 = vpop.f32.mrb[4].mxu0 }
  0xf2   : > { %v513_v56 = vpop.f32.mrb[5].mxu0  ;;  %v871_v57 = vpack.c.bf16 %v596_v52, %v594_v51  ;;  %v512_v59 = vadd.f32 %v511_v55, %v310_v49 }
  0xf3   : > { %v869_v58 = vpack.c.bf16 %v597_v54, %v595_v53  ;;  %v514_v61 = vadd.f32 %v513_v56, %v310_v49 }
  0xf4   : > { %v598_v3 = vmax.f32 %v512_v59, 0.0 }
  0xf5   : > { %v517_v62 = vpop.f32.mrb[6].mxu0  ;;  %870 = vmatprep.subr.bf16.mxu1 %v869_v58  ;;  %v599_v5 = vmax.f32 %v514_v61, 0.0  ;;  %v350_v58 = vpop.permute.xlu0 %349 }
  0xf6   : > { %v518_v63 = vadd.f32 %v517_v62, %v315_v60  ;;  %v519_v1 = vpop.f32.mrb[7].mxu0  ;;  %872 = vmatpush1.bf16.msra.mxu1 %v871_v57  ;;  %v355_v61 = vpop.permute.xlu1 %354 }
  0xf7   : > { %v520_v2 = vadd.f32 %v519_v1, %v315_v60 }
  0xf8   : > { %v600_v4 = vmax.f32 %v518_v63, 0.0 }
  0xf9   : > { %v601_v6 = vmax.f32 %v520_v2, 0.0  ;;  %v523_v7 = vpop.f32.mrb[8].mxu0 }
  0xfa   : > { %v875_v8 = vpack.c.bf16 %v600_v4, %v598_v3  ;;  %v525_v9 = vpop.f32.mrb[9].mxu0  ;;  %v524_v12 = vadd.f32 %v523_v7, %v320_v10 }
  0xfb   : > { %v873_v11 = vpack.c.bf16 %v601_v6, %v599_v5  ;;  %v526_v14 = vadd.f32 %v525_v9, %v320_v10 }
  0xfc   : > { %v602_v19 = vmax.f32 %v524_v12, 0.0 }
  0xfd   : > { %v529_v15 = vpop.f32.mrb[10].mxu0  ;;  %874 = vmatprep.subr.bf16.mxu1 %v873_v11  ;;  %v603_v21 = vmax.f32 %v526_v14, 0.0  ;;  %v360_v11 = vpop.permute.xlu0 %359 }
  0xfe   : > { %v530_v16 = vadd.f32 %v529_v15, %v325_v13  ;;  %v531_v17 = vpop.f32.mrb[11].mxu0  ;;  %876 = vmatpush1.bf16.msra.mxu1 %v875_v8  ;;  %v365_v14 = vpop.permute.xlu1 %364 }
  0xff   : > { %v532_v18 = vadd.f32 %v531_v17, %v325_v13 }
 0x100   : > { %v604_v20 = vmax.f32 %v530_v16, 0.0 }
 0x101   : > { %v605_v22 = vmax.f32 %v532_v18, 0.0  ;;  %v535_v23 = vpop.f32.mrb[12].mxu0 }
 0x102   : > { %v879_v24 = vpack.c.bf16 %v604_v20, %v602_v19  ;;  %v537_v25 = vpop.f32.mrb[13].mxu0  ;;  %v536_v28 = vadd.f32 %v535_v23, %v330_v26 }
 0x103   : > { %v877_v27 = vpack.c.bf16 %v605_v22, %v603_v21  ;;  %v538_v30 = vadd.f32 %v537_v25, %v330_v26 }
 0x104   : > { %v606_v35 = vmax.f32 %v536_v28, 0.0 }
 0x105   : > { %v541_v31 = vpop.f32.mrb[14].mxu0  ;;  %878 = vmatprep.subr.bf16.mxu1 %v877_v27  ;;  %v607_v37 = vmax.f32 %v538_v30, 0.0  ;;  %v370_v27 = vpop.permute.xlu0 %369 }
 0x106   : > { %v542_v32 = vadd.f32 %v541_v31, %v335_v29  ;;  %v543_v33 = vpop.f32.mrb[15].mxu0  ;;  %880 = vmatpush1.bf16.msra.mxu1 %v879_v24  ;;  %v375_v30 = vpop.permute.xlu1 %374 }
 0x107   : > { %v544_v34 = vadd.f32 %v543_v33, %v335_v29 }
 0x108   : > { %v608_v36 = vmax.f32 %v542_v32, 0.0 }
 0x109   : > { %v609_v38 = vmax.f32 %v544_v34, 0.0  ;;  %v547_v39 = vpop.f32.mrb[16].mxu0 }
 0x10a   : > { %v883_v40 = vpack.c.bf16 %v608_v36, %v606_v35  ;;  %v549_v41 = vpop.f32.mrb[17].mxu0  ;;  %v548_v44 = vadd.f32 %v547_v39, %v340_v42 }
 0x10b   : > { %v881_v43 = vpack.c.bf16 %v609_v38, %v607_v37  ;;  %v550_v46 = vadd.f32 %v549_v41, %v340_v42  ;;  %v626_v42 = vld [vmem:[%s1182_s3] sm:$0xff] }
 0x10c   : > { %v610_v51 = vmax.f32 %v548_v44, 0.0  ;;  %v628_v44 = vld [vmem:[%s1182_s3 + $0x10] sm:$0xff] }
 0x10d   : > { %v553_v47 = vpop.f32.mrb[18].mxu0  ;;  %882 = vmatprep.subr.bf16.mxu1 %v881_v43  ;;  %v611_v53 = vmax.f32 %v550_v46, 0.0  ;;  %v627_v43 = vld [vmem:[%s1182_s3 + $0x8] sm:$0xff]  ;;  %v637_v46 = vpop.permute.xlu0 %636 }
 0x10e   : > { %v554_v48 = vadd.f32 %v553_v47, %v345_v45  ;;  %v555_v49 = vpop.f32.mrb[19].mxu0  ;;  %884 = vmatpush1.bf16.msra.mxu1 %v883_v40 }
 0x10f   : > { %v556_v50 = vadd.f32 %v555_v49, %v345_v45  ;;  %v629_v45 = vld [vmem:[%s1182_s3 + $0x18] sm:$0xff] }
 0x110   : > { %v612_v52 = vmax.f32 %v554_v48, 0.0 }
 0x111   : > { %v613_v54 = vmax.f32 %v556_v50, 0.0  ;;  %v559_v55 = vpop.f32.mrb[20].mxu0 }
 0x112   : > { %v887_v56 = vpack.c.bf16 %v612_v52, %v610_v51  ;;  %v561_v57 = vpop.f32.mrb[21].mxu0  ;;  %v560_v60 = vadd.f32 %v559_v55, %v350_v58  ;;  %v642_v51 = vpop.permute.xlu1 %641 }
 0x113   : > { %v885_v59 = vpack.c.bf16 %v613_v54, %v611_v53  ;;  %v562_v62 = vadd.f32 %v561_v57, %v350_v58  ;;  %v647_v55 = vpop.permute.xlu0 %646 }
 0x114   : > { %v614_v4 = vmax.f32 %v560_v60, 0.0 }
 0x115   : > { %v565_v63 = vpop.f32.mrb[22].mxu0  ;;  %886 = vmatprep.subr.bf16.mxu1 %v885_v59  ;;  %v615_v6 = vmax.f32 %v562_v62, 0.0 }
 0x116   : > { %v566_v1 = vadd.f32 %v565_v63, %v355_v61  ;;  %v567_v2 = vpop.f32.mrb[23].mxu0  ;;  %888 = vmatpush1.bf16.msra.mxu1 %v887_v56  ;;  %v652_v60 = vpop.permute.xlu1 %651 }
 0x117   : > { %v568_v3 = vadd.f32 %v567_v2, %v355_v61 }
 0x118   : > { %v616_v5 = vmax.f32 %v566_v1, 0.0 }
 0x119   : > { %v617_v7 = vmax.f32 %v568_v3, 0.0  ;;  %v571_v8 = vpop.f32.mrb[24].mxu0 }
 0x11a   : > { %v891_v9 = vpack.c.bf16 %v616_v5, %v614_v4  ;;  %v573_v10 = vpop.f32.mrb[25].mxu0  ;;  %v572_v13 = vadd.f32 %v571_v8, %v360_v11 }
 0x11b   : > { %v889_v12 = vpack.c.bf16 %v617_v7, %v615_v6  ;;  %v574_v15 = vadd.f32 %v573_v10, %v360_v11 }
 0x11c   : > { %v618_v20 = vmax.f32 %v572_v13, 0.0 }
 0x11d   : > { %v577_v16 = vpop.f32.mrb[26].mxu0  ;;  %890 = vmatprep.subr.bf16.mxu1 %v889_v12  ;;  %v619_v22 = vmax.f32 %v574_v15, 0.0 }
 0x11e   : > { %v578_v17 = vadd.f32 %v577_v16, %v365_v14  ;;  %v579_v18 = vpop.f32.mrb[27].mxu0  ;;  %892 = vmatpush1.bf16.msra.mxu1 %v891_v9 }
 0x11f   : > { %v580_v19 = vadd.f32 %v579_v18, %v365_v14 }
 0x120   : > { %v620_v21 = vmax.f32 %v578_v17, 0.0 }
 0x121   : > { %v621_v23 = vmax.f32 %v580_v19, 0.0  ;;  %v583_v24 = vpop.f32.mrb[28].mxu0 }
 0x122   : > { %v895_v25 = vpack.c.bf16 %v620_v21, %v618_v20  ;;  %v585_v26 = vpop.f32.mrb[29].mxu0  ;;  %v584_v29 = vadd.f32 %v583_v24, %v370_v27 }
 0x123   : > { %v893_v28 = vpack.c.bf16 %v621_v23, %v619_v22  ;;  %v586_v31 = vadd.f32 %v585_v26, %v370_v27 }
 0x124   : > { %v622_v36 = vmax.f32 %v584_v29, 0.0 }
 0x125   : > { %v589_v32 = vpop.f32.mrb[30].mxu0  ;;  %894 = vmatprep.subr.bf16.mxu1 %v893_v28  ;;  %v623_v38 = vmax.f32 %v586_v31, 0.0 }
 0x126   : > { %v590_v33 = vadd.f32 %v589_v32, %v375_v30  ;;  %v591_v34 = vpop.f32.mrb[31].mxu0  ;;  %896 = vmatpush1.bf16.msra.mxu1 %v895_v25 }
 0x127   : > { %v592_v35 = vadd.f32 %v591_v34, %v375_v30 }
 0x128   : > { %v624_v37 = vmax.f32 %v590_v33, 0.0 }
 0x129   : > { %v625_v39 = vmax.f32 %v592_v35, 0.0 }
 0x12a   : > { %v899_v40 = vpack.c.bf16 %v624_v37, %v622_v36 }
 0x12b   : > { %v897_v41 = vpack.c.bf16 %v625_v39, %v623_v38 }
 0x12d   : > { %898 = vmatprep.subr.bf16.mxu1 %v897_v41 }
 0x12e   : > { %900 = vmatpush1.bf16.msra.mxu1 %v899_v40 }
 0x131   : > { %719 = vmatmul.mubr.f32.vlgmr.msra.gmra.mrb[0].mxu1 %v626_v42 }
 0x132   : > { %724 = vmatprep.mubr.f32.mxu1 %v954_v0 }
 0x135   : > { %725 = vmatmul.mubr.f32.gmra.mrb[2].mxu1 %v627_v43 }
 0x136   : > { %730 = vmatprep.mubr.f32.mxu1 %v954_v0 }
 0x139   : > { %731 = vmatmul.mubr.f32.gmra.mrb[4].mxu1 %v628_v44 }
 0x13a   : > { %736 = vmatprep.mubr.f32.mxu1 %v954_v0 }
 0x13d   : > { %737 = vmatmul.mubr.f32.gmra.mrb[6].mxu1 %v629_v45 }
 0x204   : > { %v720_v47 = vpop.f32.mrb[0].mxu1 }
 0x205   : > { %v721_v48 = vadd.f32 %v720_v47, %v637_v46  ;;  %v722_v49 = vpop.f32.mrb[1].mxu1 }
 0x206   : > { %v723_v50 = vadd.f32 %v722_v49, %v637_v46 }
 0x207   : > { %743 = vst [vmem:[%s262_s25] sm:$0xff] %v721_v48 }
 0x208   : > { %744 = vst [vmem:[%s262_s25 + $0x8] sm:$0xff] %v723_v50  ;;  %v726_v52 = vpop.f32.mrb[2].mxu1 }
 0x209   : > { %v727_v0 = vadd.f32 %v726_v52, %v642_v51  ;;  %v728_v53 = vpop.f32.mrb[3].mxu1 }
 0x20a   : > { %v729_v54 = vadd.f32 %v728_v53, %v642_v51 }
 0x20b   : > { %745 = vst [vmem:[%s262_s25 + $0x10] sm:$0xff] %v727_v0 }
 0x20c   : > { %746 = vst [vmem:[%s262_s25 + $0x18] sm:$0xff] %v729_v54  ;;  %v732_v56 = vpop.f32.mrb[4].mxu1 }
 0x20d   : > { %v733_v57 = vadd.f32 %v732_v56, %v647_v55  ;;  %v734_v58 = vpop.f32.mrb[5].mxu1 }
 0x20e   : > { %v735_v59 = vadd.f32 %v734_v58, %v647_v55 }
 0x20f   : > { %747 = vst [vmem:[%s262_s25 + $0x20] sm:$0xff] %v733_v57 }
 0x210   : > { %748 = vst [vmem:[%s262_s25 + $0x28] sm:$0xff] %v735_v59  ;;  %v738_v61 = vpop.f32.mrb[6].mxu1 }
 0x211   : > { %v739_v62 = vadd.f32 %v738_v61, %v652_v60  ;;  %v740_v63 = vpop.f32.mrb[7].mxu1 }
 0x212   : > { %v741_v1 = vadd.f32 %v740_v63, %v652_v60 }
 0x213   : > { %749 = vst [vmem:[%s262_s25 + $0x30] sm:$0xff] %v739_v62 }
 0x214   : > { %750 = vst [vmem:[%s262_s25 + $0x38] sm:$0xff] %v741_v1 }
 0x215 PF: > { %s15_s20 = sadd.s32 1, %s952_s20   ;;  %s1185_s18 = smov %s948_s19 }
 0x216   : > { %p12_p5 = scmp.ge.s32.totalorder %s15_s20, 4   ;;  %s1186_s19 = smov %s1188_s21 }
 0x218   :  { %14 = sbr.rel (!%p12_p5) target bundleno = 2 (0x2), region = 70 }

</bundles_post_ra>
